<compile_context>
chip_gen: v7x
topology: tpu7x:2x2x1
jax: 0.10.0
libtpu: 0.0.40
codegen_flags: <defaults>
</compile_context>

<pallas_src>
import jax
import jax.numpy as jnp
from jax.experimental import pallas as pl
from jax.experimental.pallas import tpu as pltpu


def _round_up(x, m):
    return (x + m - 1) // m * m


def _linear_leaky_kernel(x_ref, w_ref, b_ref, o_ref):
    # x_ref: (tm, tk) bf16   w_ref: (tk, tn) bf16
    # b_ref: (1, tn)  f32    o_ref: (tm, tn) f32  (resident across K)
    k = pl.program_id(2)

    partial = jnp.dot(x_ref[...], w_ref[...],
                      preferred_element_type=jnp.float32)

    @pl.when(k == 0)
    def _():
        o_ref[...] = partial

    @pl.when(k > 0)
    def _():
        o_ref[...] += partial

    @pl.when(k == pl.num_programs(2) - 1)
    def _():
        y = o_ref[...] + b_ref[...]
        # LeakyReLU, PyTorch default negative_slope = 0.01 (single VPU max op).
        o_ref[...] = jnp.maximum(y, 0.01 * y)


class ProcessingInputPallas:
    """Forward of ProcessingInput: LeakyReLU(x @ weight.T + bias).

    Parameters (PyTorch layout: weight (MID, IN), bias (MID,)) are padded,
    transposed and cast to bf16 exactly once at construction time.
    """

    def __init__(self, weight, bias, *, tm=512, tn=512, tk=1024,
                 vmem_limit_bytes=48 << 20):
        MID, IN = weight.shape
        self.middle_size = MID
        self.input_size = IN

        # Tile sizes: lane-dense (multiples of 128 on N/K), clamped to the
        # (padded) problem size.  tn stays a multiple of 256 where possible
        # (v7x 2x256^2 MXU); 128-multiples are enough on v5e.
        self.tn = min(tn, _round_up(MID, 128))
        self.tk = min(tk, _round_up(IN, 128))
        self.tm = tm
        self.vmem_limit_bytes = vmem_limit_bytes

        MIDp = _round_up(MID, self.tn)
        INp = _round_up(IN, self.tk)
        self.MIDp, self.INp = MIDp, INp

        # One-time parameter prep (out of the per-call hot path):
        #   weight (MID, IN) -> pad -> transpose -> (INp, MIDp) bf16
        #   bias   (MID,)    -> pad -> (1, MIDp) f32
        wp = jnp.pad(weight, ((0, MIDp - MID), (0, INp - IN)))
        self.w_prepped = jnp.asarray(wp.T, dtype=jnp.bfloat16)          # (INp, MIDp)
        self.b_prepped = jnp.pad(bias, (0, MIDp - MID)).reshape(1, MIDp).astype(jnp.float32)

    def __call__(self, x):
        B, IN = x.shape
        assert IN == self.input_size
        MID, MIDp, INp = self.middle_size, self.MIDp, self.INp
        tn, tk = self.tn, self.tk

        tm = min(self.tm, _round_up(B, 8))
        Bp = _round_up(B, tm)

        # Pad activations and feed the MXU bf16 (halves HBM/DMA bytes too).
        xp = x if (Bp == B and INp == IN) else jnp.pad(x, ((0, Bp - B), (0, INp - IN)))
        xp = xp.astype(jnp.bfloat16)

        grid = (Bp // tm, MIDp // tn, INp // tk)

        out_padded = pl.pallas_call(
            _linear_leaky_kernel,
            out_shape=jax.ShapeDtypeStruct((Bp, MIDp), jnp.float32),
            grid_spec=pltpu.PrefetchScalarGridSpec(
                num_scalar_prefetch=0,
                grid=grid,
                in_specs=[
                    pl.BlockSpec((tm, tk), lambda i, j, k: (i, k)),  # activations
                    pl.BlockSpec((tk, tn), lambda i, j, k: (k, j)),  # weight (INp, MIDp)
                    pl.BlockSpec((1, tn), lambda i, j, k: (0, j)),   # bias
                ],
                out_specs=pl.BlockSpec((tm, tn), lambda i, j, k: (i, j)),
            ),
            compiler_params=pltpu.CompilerParams(
                dimension_semantics=("parallel", "parallel", "arbitrary"),
                vmem_limit_bytes=self.vmem_limit_bytes,
            ),
        )(xp, self.w_prepped, self.b_prepped)

        if Bp == B and MIDp == MID:
            return out_padded
        return out_padded[:B, :MID]


if __name__ == "__main__":
    batch = 8
    input_size = 32
    middle_size = 16

    key = jax.random.PRNGKey(0)
    kx, kw, kb = jax.random.split(key, 3)

    x = jax.random.normal(kx, (batch, input_size), dtype=jnp.float32)
    # Deterministic param init mimicking nn.Linear's uniform(-1/sqrt(in), 1/sqrt(in))
    bound = 1.0 / (input_size ** 0.5)
    weight = jax.random.uniform(kw, (middle_size, input_size),
                                minval=-bound, maxval=bound, dtype=jnp.float32)
    bias = jax.random.uniform(kb, (middle_size,),
                              minval=-bound, maxval=bound, dtype=jnp.float32)

    layer = ProcessingInputPallas(weight, bias)   # one-time param prep
    out = layer(x)
    out = jax.block_until_ready(out)

    # Reference check in plain JAX (f32); tolerance widened for the bf16 MXU path.
    ref = x @ weight.T + bias
    ref = jnp.where(ref >= 0, ref, 0.01 * ref)
    assert out.shape == (batch, middle_size)
    assert jnp.allclose(out, ref, atol=5e-2, rtol=5e-2), \
        f"max abs err {float(jnp.max(jnp.abs(out - ref)))}"

    print("KERNEL_OK")
</pallas_src>

<mosaic_0001>
module attributes {stable_mosaic.version = 11 : i64} {
  func.func @_linear_leaky_kernel(%arg0: i32, %arg1: i32, %arg2: i32, %arg3: memref<8x128xbf16, #tpu.memory_space<vmem>>, %arg4: memref<128x128xbf16, #tpu.memory_space<vmem>>, %arg5: memref<1x128xf32, #tpu.memory_space<vmem>>, %arg6: memref<8x128xf32, #tpu.memory_space<vmem>>) attributes {dimension_semantics = [#tpu.dimension_semantics<parallel>, #tpu.dimension_semantics<parallel>, #tpu.dimension_semantics<arbitrary>], iteration_bounds = array<i64: 1, 1, 1>, scalar_prefetch = 0 : i64, scratch_operands = 0 : i64, tpu.core_type = #tpu.core_type<tc>, window_params = [{transform_indices = @transform_0, window_bounds = array<i64: 8, 128>}, {transform_indices = @transform_1, window_bounds = array<i64: 128, 128>}, {transform_indices = @transform_2, window_bounds = array<i64: 1, 128>}, {transform_indices = @transform_3, window_bounds = array<i64: 8, 128>}]} {
    %c0 = arith.constant 0 : index
    %c0_0 = arith.constant 0 : index
    %0 = vector.load %arg3[%c0, %c0_0] : memref<8x128xbf16, #tpu.memory_space<vmem>>, vector<8x128xbf16>
    %c0_1 = arith.constant 0 : index
    %c0_2 = arith.constant 0 : index
    %1 = vector.load %arg4[%c0_1, %c0_2] : memref<128x128xbf16, #tpu.memory_space<vmem>>, vector<128x128xbf16>
    %cst = arith.constant dense<0.000000e+00> : vector<8x128xf32>
    %2 = tpu.matmul %0, %1, %cst {dimension_numbers = #tpu.dot_dimension_numbers<[1], [0], [0], [1], [0, 0, 1, 1], [], []>} : vector<8x128xbf16>, vector<128x128xbf16>, vector<8x128xf32> -> vector<8x128xf32>
    %c0_i32 = arith.constant 0 : i32
    %3 = arith.cmpi eq, %arg2, %c0_i32 : i32
    %4 = arith.extui %3 : i1 to i32
    %c0_i32_3 = arith.constant 0 : i32
    %5 = arith.cmpi ne, %4, %c0_i32_3 : i32
    scf.if %5 {
      %c0_8 = arith.constant 0 : index
      %c0_9 = arith.constant 0 : index
      %12 = vector.load %arg6[%c0_8, %c0_9] : memref<8x128xf32, #tpu.memory_space<vmem>>, vector<8x128xf32>
      tpu.vector_store %arg6[%c0_8, %c0_9], %2 {strides = array<i32>} : memref<8x128xf32, #tpu.memory_space<vmem>>, vector<8x128xf32>,
    } else {
    }
    %c0_i32_4 = arith.constant 0 : i32
    %6 = arith.cmpi sgt, %arg2, %c0_i32_4 : i32
    %7 = arith.extui %6 : i1 to i32
    %c0_i32_5 = arith.constant 0 : i32
    %8 = arith.cmpi ne, %7, %c0_i32_5 : i32
    scf.if %8 {
      %c0_8 = arith.constant 0 : index
      %c0_9 = arith.constant 0 : index
      %12 = vector.load %arg6[%c0_8, %c0_9] : memref<8x128xf32, #tpu.memory_space<vmem>>, vector<8x128xf32>
      %13 = arith.addf %12, %2 : vector<8x128xf32>
      %c0_10 = arith.constant 0 : index
      %c0_11 = arith.constant 0 : index
      %14 = vector.load %arg6[%c0_10, %c0_11] : memref<8x128xf32, #tpu.memory_space<vmem>>, vector<8x128xf32>
      tpu.vector_store %arg6[%c0_10, %c0_11], %13 {strides = array<i32>} : memref<8x128xf32, #tpu.memory_space<vmem>>, vector<8x128xf32>,
    } else {
    }
    %c0_i32_6 = arith.constant 0 : i32
    %9 = arith.cmpi eq, %arg2, %c0_i32_6 : i32
    %10 = arith.extui %9 : i1 to i32
    %c0_i32_7 = arith.constant 0 : i32
    %11 = arith.cmpi ne, %10, %c0_i32_7 : i32
    scf.if %11 {
      %c0_8 = arith.constant 0 : index
      %c0_9 = arith.constant 0 : index
      %12 = vector.load %arg6[%c0_8, %c0_9] : memref<8x128xf32, #tpu.memory_space<vmem>>, vector<8x128xf32>
      %c0_10 = arith.constant 0 : index
      %c0_11 = arith.constant 0 : index
      %13 = vector.load %arg5[%c0_10, %c0_11] : memref<1x128xf32, #tpu.memory_space<vmem>>, vector<1x128xf32>
      %14 = vector.broadcast %13 : vector<1x128xf32> to vector<8x128xf32>
      %15 = arith.addf %12, %14 : vector<8x128xf32>
      %cst_12 = arith.constant 0.00999999977 : f32
      %16 = vector.broadcast %cst_12 : f32 to vector<8x128xf32>
      %17 = arith.mulf %16, %15 : vector<8x128xf32>
      %18 = arith.maximumf %15, %17 : vector<8x128xf32>
      %c0_13 = arith.constant 0 : index
      %c0_14 = arith.constant 0 : index
      %19 = vector.load %arg6[%c0_13, %c0_14] : memref<8x128xf32, #tpu.memory_space<vmem>>, vector<8x128xf32>
      tpu.vector_store %arg6[%c0_13, %c0_14], %18 {strides = array<i32>} : memref<8x128xf32, #tpu.memory_space<vmem>>, vector<8x128xf32>,
    } else {
    }
    return
  }
  func.func @transform_0(%arg0: i32, %arg1: i32, %arg2: i32) -> (i32, i32) {
    %c0_i32 = arith.constant 0 : i32
    return %arg0, %arg2 : i32, i32
  }
  func.func @transform_1(%arg0: i32, %arg1: i32, %arg2: i32) -> (i32, i32) {
    %c0_i32 = arith.constant 0 : i32
    return %arg2, %arg1 : i32, i32
  }
  func.func @transform_2(%arg0: i32, %arg1: i32, %arg2: i32) -> (i32, i32) {
    %c0_i32 = arith.constant 0 : i32
    %c0_i32_0 = arith.constant 0 : i32
    return %c0_i32, %arg1 : i32, i32
  }
  func.func @transform_3(%arg0: i32, %arg1: i32, %arg2: i32) -> (i32, i32) {
    %c0_i32 = arith.constant 0 : i32
    return %arg0, %arg1 : i32, i32
  }
}

</mosaic_0001>

<bundles_post_ra>
// kernel: tpu_custom_call.1
= control target key start
LH: loop header
LB: loop body
LE: loop exit
PB: predicated region body
PF: predicated region fallthrough
CT: control target
= control target key end

     0   :  { %8 = vsyncpa [#allocation3], 0  ;;  %s388_s0 = inlined_call_operand.hbm [shape: bf16[8,128], index: 0, kind: input, shape index: {}]   ;;  %s389_s1 = inlined_call_operand.hbm [shape: bf16[128,128], index: 1, kind: input, shape index: {}]   ;;  %s390_s2 = inlined_call_operand.vmem [shape: f32[1,128], index: 2, kind: input, shape index: {}]   ;;  %s391_s3 = inlined_call_operand.hbm [shape: f32[8,128], index: 3, kind: output, shape index: {}]  }
   0x1   :  { %9 = vsyncpa [#allocation6], 0 }
   0x2   :  { %10 = vsyncpa [#allocation4], 0  ;;  %s315_s12 = smov [#allocation2]   ;;  %s316_s14 = smov [#allocation5]  }
   0x3   :  { %s17_s13 = sshll.u32 %s315_s12, 4  ;;  %s26_s15 = sshll.u32 %s316_s14, 4  ;;  %s18_s13 = int_to_ptr.vmem [resolvable:$true] %s17_s13  ;;  %s342_s15 = int_to_ptr.vmem [resolvable:$true] %s26_s15 }
   0x4   :  { %s243_s18 = scalar_lea.hbm %s388_s0, 64 }
   0x5   :  { %p244_p0 = scmp.ne.s32.totalorder %s388_s0, %s243_s18  ;;  %p247_p1 = scmp.lt.u32.totalorder %s243_s18, %s388_s0 }
   0x7   :  { %p249_p2 = pnand %p247_p1, %p244_p0 }
   0x9   :  { %252 = shalt.err (!%p249_p2)
}
   0xa   :  { %s253_s23 = scalar_lea.vmem %s18_s13, 64  ;;  %p258_p4 = scmp.lt.s32.totalorder %s18_s13, %s18_s13 }
   0xb   :  { %p254_p3 = scmp.ne.s32.totalorder %s18_s13, %s253_s23  ;;  %p259_p5 = scmp.lt.s32.totalorder %s253_s23, %s253_s23 }
   0xd   :  { %p260_p6 = por %p259_p5, %p258_p4 }
   0xf   :  { %p261_p7 = pnand %p260_p6, %p254_p3 }
  0x11   :  { %264 = shalt.err (!%p261_p7)
}
  0x12   :  { %20 = dma.hbm_to_vmem [thread:$0]  %s388_s0, 64, %s18_s13, [#allocation3]  }
  0x13   :  { %s265_s28 = scalar_lea.hbm %s389_s1, 1024 }
  0x14   :  { %p266_p8 = scmp.ne.s32.totalorder %s389_s1, %s265_s28  ;;  %p269_p9 = scmp.lt.u32.totalorder %s265_s28, %s389_s1 }
  0x16   :  { %p271_p10 = pnand %p269_p9, %p266_p8 }
  0x18   :  { %274 = shalt.err (!%p271_p10)
}
  0x19   :  { %s275_s6 = scalar_lea.vmem %s342_s15, 1024  ;;  %p280_p12 = scmp.lt.s32.totalorder %s342_s15, %s342_s15 }
  0x1a   :  { %p276_p11 = scmp.ne.s32.totalorder %s342_s15, %s275_s6  ;;  %p281_p13 = scmp.lt.s32.totalorder %s275_s6, %s275_s6 }
  0x1c   :  { %p282_p0 = por %p281_p13, %p280_p12 }
  0x1e   :  { %p283_p1 = pnand %p282_p0, %p276_p11 }
  0x20   :  { %286 = shalt.err (!%p283_p1)
}
  0x21   :  { %s317_s0 = smov 64   ;;  %s318_s7 = smov 4  }
  0x22   :  { %32 = dma.hbm_to_vmem [thread:$0]  %s389_s1, 1024, %s342_s15, [#allocation6], %s317_s0, %s317_s0, %s318_s7  }
  0x23   :  { %309 = dma.done.wait [#allocation3], 64  }
  0x24   :  { %310 = vsyncadd [#allocation3], 4294967232 }
  0x25   :  { %311 = dma.done.wait [#allocation6], 1024  }
  0x26   :  { %312 = vsyncadd [#allocation6], 4294966272  ;;  %v319_v0 = vmov 0.0   ;;  %vm320_vm0 = vmmov 0   ;;  %v235_v1 = vld [vmem:[#allocation5] sm:$0xff]   ;;  %v236_v2 = vld [vmem:[#allocation5 + $0x8] sm:$0xff]  }
  0x27   :  { %208 = vmatprep.subr.bf16.mxu0 %v319_v0  ;;  %224 = vmatprep.mubr.msk.bf16.mxu0 %vm320_vm0, %v319_v0  ;;  %v237_v3 = vld [vmem:[#allocation5 + $0x10] sm:$0xff]   ;;  %v238_v4 = vld [vmem:[#allocation5 + $0x18] sm:$0xff]   ;;  %v239_v5 = vld [vmem:[#allocation5 + $0x20] sm:$0xff]   ;;  %s321_s11 = smov [#allocation7]  }
  0x28   :  { %209 = vmatpush3.bf16.msra.mxu0 %v235_v1  ;;  %v240_v6 = vld [vmem:[#allocation5 + $0x28] sm:$0xff]   ;;  %v241_v7 = vld [vmem:[#allocation5 + $0x30] sm:$0xff]   ;;  %v242_v8 = vld [vmem:[#allocation5 + $0x38] sm:$0xff]   ;;  %s180_s12 = sshll.u32 %s321_s11, 4  ;;  %s181_s12 = int_to_ptr.vmem [resolvable:$true] %s180_s12 }
  0x29   :  { %210 = vmatprep.subr.bf16.mxu0 %v319_v0  ;;  %v42_v9 = vld [vmem:[#allocation2] sm:$0xf]  ;;  %s287_s13 = scalar_lea.vmem %s181_s12, 128  ;;  %p292_p3 = scmp.lt.s32.totalorder %s181_s12, %s181_s12 }
  0x2a   :  { %v198_v10 = vld [vmem:[%s390_s2] ss:$0 sm:$0xff]  ;;  %p288_p2 = scmp.ne.s32.totalorder %s181_s12, %s287_s13  ;;  %p293_p4 = scmp.lt.s32.totalorder %s287_s13, %s287_s13 }
  0x2c   :  { %211 = vmatpush3.bf16.msra.mxu0 %v236_v2  ;;  %p294_p5 = por %p293_p4, %p292_p3 }
  0x2d   :  { %212 = vmatprep.subr.bf16.mxu0 %v319_v0 }
  0x2e   :  { %p295_p6 = pnand %p294_p5, %p288_p2 }
  0x30   :  { %213 = vmatpush3.bf16.msra.mxu0 %v237_v3 }
  0x31   :  { %214 = vmatprep.subr.bf16.mxu0 %v319_v0 }
  0x34   :  { %215 = vmatpush3.bf16.msra.mxu0 %v238_v4 }
  0x35   :  { %216 = vmatprep.subr.bf16.mxu0 %v319_v0 }
  0x38   :  { %217 = vmatpush3.bf16.msra.mxu0 %v239_v5 }
  0x39   :  { %218 = vmatprep.subr.bf16.mxu0 %v319_v0 }
  0x3c   :  { %219 = vmatpush3.bf16.msra.mxu0 %v240_v6 }
  0x3d   :  { %220 = vmatprep.subr.bf16.mxu0 %v319_v0 }
  0x40   :  { %221 = vmatpush3.bf16.msra.mxu0 %v241_v7 }
  0x41   :  { %222 = vmatprep.subr.bf16.mxu0 %v319_v0 }
  0x44   :  { %223 = vmatpush3.bf16.msra.mxu0 %v242_v8 }
  0x47   :  { %225 = vmatmul.mubr.bf16.vlgmr.msra.gmra.mrb[0].mxu0 %v42_v9 }
 0x11a   :  { %v141_v11 = vpop.f32.mrb[0].mxu0 }
 0x11b   :  { %v226_v12 = vpop.f32.mrb[1].mxu0  ;;  %v170_v13 = vadd.f32 %v198_v10, %v141_v11 }
 0x11c   :  { %v144_v14 = vpop.f32.mrb[2].mxu0 }
 0x11d   :  { %v227_v15 = vpop.f32.mrb[3].mxu0  ;;  %v171_v16 = vmul.f32 0.01, %v170_v13 }
 0x11f   :  { %v172_v17 = vmax.f32 %v170_v13, %v171_v16 }
 0x121   :  { %173 = vst [vmem:[#allocation7] sm:$0xff] %v172_v17 }
 0x122   :  { %298 = shalt.err (!%p295_p6)
}
 0x123   :  { %s299_s15 = scalar_lea.hbm %s391_s3, 128 }
 0x124   :  { %p300_p7 = scmp.ne.s32.totalorder %s391_s3, %s299_s15  ;;  %p303_p8 = scmp.lt.u32.totalorder %s299_s15, %s391_s3 }
 0x126   :  { %p305_p9 = pnand %p303_p8, %p300_p7 }
 0x128   :  { %308 = shalt.err (!%p305_p9)
}
 0x129   :  { %183 = dma.vmem_to_hbm [thread:$0]  %s181_s12, 128, %s391_s3, [#allocation4]  }
 0x12a   :  { %313 = dma.done.wait [#allocation4], 128  }
 0x12b   :  { %314 = vsyncadd [#allocation4], 4294967168 }
 0x12c   :  { %187 = vsyncpa [#allocation3], 1 }
 0x12d   :  { %188 = vsyncpa [#allocation6], 1 }
 0x12e   :  { %189 = vsyncpa [#allocation4], 1 }

</bundles_post_ra>
